<compile_context>
chip_gen: v7x
topology: tpu7x:2x2x1
jax: 0.10.0
libtpu: 0.0.40
codegen_flags: <defaults>
</compile_context>

<pallas_src>
import functools

import jax
import jax.numpy as jnp
import numpy as np
from jax.experimental import pallas as pl
from jax.experimental.pallas import tpu as pltpu


def _relu(v):
    return jnp.maximum(v, 0.0)


# ---------------------------------------------------------------------------
# Pallas kernel: one batch tile (features on sublanes, batch on lanes)
# ---------------------------------------------------------------------------
def depth_route_kernel(
    xt_ref,                      # [D_in+1, TB]   (last row = task idx as float)
    w0_ref, b0_ref,              # [H0, D_in+1], [H0, 1]  (idx column zeroed)
    w1_ref, b1_ref,              # [H1, H0],     [H1, 1]
    we0_ref, be0_ref,            # [H1, 1],      [H1, 1]
    wg0_ref, bg0_ref,            # [Hg, H1],     [Hg, 1]
    wgl_ref, bgl_ref,            # [G,  Hg],     [G, 1]
    wm0_ref, bm0_ref,            # [Hm, H1],     [Hm, 1]
    wmr_ref, bmr_ref,            # [M-1, Hm, Hm],[M-1, Hm, 1]   (packed fc1..fcM-1)
    wl_ref, bl_ref,              # [O, Hm],      [O, 1]
    out_ref,                     # [O, TB]
    *,
    module_num: int,
    d_in: int,
):
    f32 = jnp.float32
    xt = xt_ref[...]                                   # [D_in+1, TB]
    idx_row = xt[d_in:d_in + 1, :]                     # [1, TB]

    # ---- base MLP: relu hidden, identity last (transposed: y^T = W x^T + b) ----
    h = _relu(jnp.dot(w0_ref[...], xt, preferred_element_type=f32) + b0_ref[...])
    base_out = jnp.dot(w1_ref[...], h, preferred_element_type=f32) + b1_ref[...]   # [H1, TB]

    # ---- em_base: single linear on the scalar idx (outer product + bias) ----
    emb = we0_ref[...] * idx_row + be0_ref[...]        # [H1, TB]

    # ---- cond_ob: gate input = emb * base_out, module input = relu(base_out) ----
    gate_in = emb * base_out
    mod_in = _relu(base_out)

    # ---- gate MLP: relu hidden, linear final -> G = M(M+1)/2 logits ----
    g = _relu(jnp.dot(wg0_ref[...], gate_in, preferred_element_type=f32) + bg0_ref[...])
    logits = jnp.dot(wgl_ref[...], g, preferred_element_type=f32) + bgl_ref[...]    # [G, TB]

    def chunk_softmax_rows(c):
        """Softmax over gate chunk c (width c+1); returns c+1 rows of shape [1, TB].

        Per-chunk max (not global) so a chunk far below the row max cannot
        underflow to a zero denominator; denominator >= 1 by construction.
        """
        s = c * (c + 1) // 2
        rows = [logits[s + j:s + j + 1, :] for j in range(c + 1)]
        m = rows[0]
        for r in rows[1:]:
            m = jnp.maximum(m, r)
        es = [jnp.exp(r - m) for r in rows]
        denom = es[0]
        for e in es[1:]:
            denom = denom + e
        inv = pl.reciprocal(denom, approx=False)
        return [e * inv for e in es]

    # ---- depth-routed module stack (top_k == module_num, use_resnet=False) ----
    outs = [_relu(jnp.dot(wm0_ref[...], mod_in, preferred_element_type=f32) + bm0_ref[...])]
    for k in range(1, module_num):
        if k == 1:
            # width-1 chunk: softmax over a single logit is exactly 1
            inp = outs[0]
        else:
            gw = chunk_softmax_rows(k - 1)             # width k
            inp = gw[0] * outs[0]
            for j in range(1, k):
                inp = inp + gw[j] * outs[j]
        hk = _relu(jnp.dot(wmr_ref[k - 1], inp, preferred_element_type=f32)
                   + bmr_ref[k - 1])
        outs.append(hk)

    gw = chunk_softmax_rows(module_num - 1)            # final chunk, width M
    last = gw[0] * outs[0]
    for j in range(1, module_num):
        last = last + gw[j] * outs[j]

    # ---- final linear (lane-dense unmasked store) ----
    out_ref[...] = jnp.dot(wl_ref[...], last, preferred_element_type=f32) + bl_ref[...]


# ---------------------------------------------------------------------------
# Wrapper: batch grid (batch on lanes), weights VMEM-resident, parallel axis
# ---------------------------------------------------------------------------
def _round_up(a, m):
    return ((a + m - 1) // m) * m


def depth_route_net_forward(x, idx_f, params, *, module_num, output_shape,
                            block_batch=2048):
    # cond_ob multiply requires em_base output width == base output width
    assert params["we0"].shape[0] == params["w1"].shape[0], \
        "em_hidden must equal hidden_shapes[-1] for cond_ob"

    B, D_in = x.shape

    # batch-on-lanes layout: [features, batch]; fold idx in as an extra feature row
    xt = jnp.concatenate([x, idx_f.astype(x.dtype)], axis=1).T          # [D_in+1, B]
    # pad w0 with a zero column so the folded idx row is ignored by the base MLP
    w0_ext = jnp.concatenate(
        [params["w0"], jnp.zeros((params["w0"].shape[0], 1), params["w0"].dtype)],
        axis=1)

    # Batch tile: lane axis must be a multiple of 128.  Keep >= 2 grid steps
    # when the batch allows it so v7x's two TensorCores both get work.
    tb = _round_up(min(block_batch, max(pl.cdiv(B, 2), 1)), 128)
    tb = min(tb, _round_up(B, 128))
    n_blocks = pl.cdiv(B, tb)
    Bp = n_blocks * tb
    if Bp != B:
        xt = jnp.pad(xt, ((0, 0), (0, Bp - B)))

    weights = [
        w0_ext, params["b0"], params["w1"], params["b1"],
        params["we0"], params["be0"],
        params["wg0"], params["bg0"], params["wgl"], params["bgl"],
        params["wm0"], params["bm0"], params["wmr"], params["bmr"],
        params["wl"], params["bl"],
    ]

    act_spec = lambda rows: pl.BlockSpec((rows, tb), lambda i: (0, i))
    weight_spec = lambda w: pl.BlockSpec(w.shape, lambda i, nd=w.ndim: (0,) * nd)

    grid_spec = pltpu.PrefetchScalarGridSpec(
        num_scalar_prefetch=0,
        grid=(n_blocks,),
        in_specs=[act_spec(D_in + 1)] + [weight_spec(w) for w in weights],
        out_specs=act_spec(output_shape),
    )

    out_t = pl.pallas_call(
        functools.partial(depth_route_kernel, module_num=module_num, d_in=D_in),
        out_shape=jax.ShapeDtypeStruct((output_shape, Bp), jnp.float32),
        grid_spec=grid_spec,
        compiler_params=pltpu.CompilerParams(
            dimension_semantics=("parallel",),       # shard batch tiles across TCs (v7x)
            vmem_limit_bytes=32 * 1024 * 1024,       # safe on v5e/v6e/v7x; usage << limit
        ),
    )(xt, *weights)

    return out_t[:, :B].T                            # back to [B, output_shape]


# ---------------------------------------------------------------------------
# Deterministic parameter init (mirrors _fanin_init / _constant_bias_init /
# uniform_init; weights stored in PyTorch layout [out, in], biases [out, 1])
# ---------------------------------------------------------------------------
def _linear_params(key, in_dim, out_dim, *, last=False):
    kw, kb = jax.random.split(key)
    if last:
        bound = 0.003
        w = jax.random.uniform(kw, (out_dim, in_dim), jnp.float32, -bound, bound)
        b = jax.random.uniform(kb, (out_dim, 1), jnp.float32, -bound, bound)
    else:
        # _fanin_init quirk: fan_in = weight.size(0) = out_features for nn.Linear
        bound = float(np.sqrt(1.0 / out_dim))
        w = jax.random.uniform(kw, (out_dim, in_dim), jnp.float32, -bound, bound)
        b = jnp.full((out_dim, 1), 0.1, jnp.float32)
    return w, b


def make_params(key, *, input_shape, hidden_shapes, em_hidden, module_hidden,
                module_num, gate_hidden, output_shape):
    assert len(hidden_shapes) == 2, "kernel specialized for a 2-layer base MLP"
    keys = jax.random.split(key, 8 + module_num)
    p = {}
    # base MLP: input_shape -> hidden_shapes[0] -> hidden_shapes[1]
    p["w0"], p["b0"] = _linear_params(keys[0], input_shape, hidden_shapes[0])
    p["w1"], p["b1"] = _linear_params(keys[1], hidden_shapes[0], hidden_shapes[1])
    # em_base MLP: 1 -> em_hidden
    p["we0"], p["be0"] = _linear_params(keys[2], 1, em_hidden)
    # gate MLP: em_hidden -> gate_hidden -> M(M+1)/2
    gate_out = module_num * (module_num + 1) // 2
    p["wg0"], p["bg0"] = _linear_params(keys[3], em_hidden, gate_hidden)
    p["wgl"], p["bgl"] = _linear_params(keys[4], gate_hidden, gate_out)
    # module fcs: base_out -> module_hidden, then (M-1) x (module_hidden -> module_hidden)
    p["wm0"], p["bm0"] = _linear_params(keys[5], hidden_shapes[-1], module_hidden)
    wms, bms = [], []
    for k in range(module_num - 1):
        w, b = _linear_params(keys[6 + k], module_hidden, module_hidden)
        wms.append(w)
        bms.append(b)
    p["wmr"] = jnp.stack(wms)                        # [M-1, Hm, Hm]
    p["bmr"] = jnp.stack(bms)                        # [M-1, Hm, 1]
    # last linear (uniform_init)
    p["wl"], p["bl"] = _linear_params(keys[6 + module_num - 1], module_hidden,
                                      output_shape, last=True)
    return p


# ---------------------------------------------------------------------------
# Pure-JAX reference for correctness check
# ---------------------------------------------------------------------------
def ref_forward(x, idx_f, p, *, module_num):
    relu = lambda v: jnp.maximum(v, 0.0)
    lin = lambda a, w, b: a @ w.T + b.T
    h = relu(lin(x, p["w0"], p["b0"]))
    base_out = lin(h, p["w1"], p["b1"])
    emb = lin(idx_f, p["we0"], p["be0"])
    gate_input = emb * base_out
    module_input = relu(base_out)
    g = relu(lin(gate_input, p["wg0"], p["bg0"]))
    gate_logits = lin(g, p["wgl"], p["bgl"])

    def sm(s, n):
        return jax.nn.softmax(gate_logits[:, s:s + n], axis=-1)

    outs = [relu(lin(module_input, p["wm0"], p["bm0"]))]
    start = 0
    for k in range(1, module_num):
        gk = sm(start, k)
        start += k
        inp = sum(gk[:, j:j + 1] * outs[j] for j in range(k))
        outs.append(relu(lin(inp, p["wmr"][k - 1], p["bmr"][k - 1])))
    gM = sm(start, module_num)
    last = sum(gM[:, j:j + 1] * outs[j] for j in range(module_num))
    return lin(last, p["wl"], p["bl"])


if __name__ == "__main__":
    # Small config consistent with the module
    B = 40
    task_num = 4
    input_shape = 16
    hidden_shapes = [32, 32]
    em_hidden = 32          # em_base output must match base output (cond_ob multiply)
    module_hidden = 32
    module_num = 4
    gate_hidden = 32
    output_shape = 8

    key = jax.random.PRNGKey(0)
    kx, kidx, kp, kx2, kidx2 = jax.random.split(key, 5)

    x = jax.random.normal(kx, (B, input_shape), jnp.float32)
    idx = jax.random.randint(kidx, (B, 1), 0, task_num)
    idx_f = idx.astype(jnp.float32)   # em_base consumes idx as a 1-d float feature

    params = make_params(
        kp, input_shape=input_shape, hidden_shapes=hidden_shapes,
        em_hidden=em_hidden, module_hidden=module_hidden, module_num=module_num,
        gate_hidden=gate_hidden, output_shape=output_shape)

    # 1) default tile (single grid step; batch padded up to a lane multiple)
    ref = ref_forward(x, idx_f, params, module_num=module_num)
    out = depth_route_net_forward(
        x, idx_f, params, module_num=module_num, output_shape=output_shape)
    out = jax.block_until_ready(out)
    np.testing.assert_allclose(np.asarray(out), np.asarray(ref), rtol=2e-3, atol=2e-3)

    # 2) small tile + larger batch to exercise the multi-step grid / padding path
    B2 = 300
    x2 = jax.random.normal(kx2, (B2, input_shape), jnp.float32)
    idx2 = jax.random.randint(kidx2, (B2, 1), 0, task_num).astype(jnp.float32)
    ref2 = ref_forward(x2, idx2, params, module_num=module_num)
    out2 = depth_route_net_forward(
        x2, idx2, params, module_num=module_num, output_shape=output_shape,
        block_batch=128)
    out2 = jax.block_until_ready(out2)
    np.testing.assert_allclose(np.asarray(out2), np.asarray(ref2), rtol=2e-3, atol=2e-3)

    print("KERNEL_OK")
</pallas_src>

<mosaic_0001>
module attributes {stable_mosaic.version = 11 : i64} {
  func.func @depth_route_kernel(%arg0: i32, %arg1: memref<17x128xf32, #tpu.memory_space<vmem>>, %arg2: memref<32x17xf32, #tpu.memory_space<vmem>>, %arg3: memref<32x1xf32, #tpu.memory_space<vmem>>, %arg4: memref<32x32xf32, #tpu.memory_space<vmem>>, %arg5: memref<32x1xf32, #tpu.memory_space<vmem>>, %arg6: memref<32x1xf32, #tpu.memory_space<vmem>>, %arg7: memref<32x1xf32, #tpu.memory_space<vmem>>, %arg8: memref<32x32xf32, #tpu.memory_space<vmem>>, %arg9: memref<32x1xf32, #tpu.memory_space<vmem>>, %arg10: memref<10x32xf32, #tpu.memory_space<vmem>>, %arg11: memref<10x1xf32, #tpu.memory_space<vmem>>, %arg12: memref<32x32xf32, #tpu.memory_space<vmem>>, %arg13: memref<32x1xf32, #tpu.memory_space<vmem>>, %arg14: memref<3x32x32xf32, #tpu.memory_space<vmem>>, %arg15: memref<3x32x1xf32, #tpu.memory_space<vmem>>, %arg16: memref<8x32xf32, #tpu.memory_space<vmem>>, %arg17: memref<8x1xf32, #tpu.memory_space<vmem>>, %arg18: memref<8x128xf32, #tpu.memory_space<vmem>>) attributes {dimension_semantics = [#tpu.dimension_semantics<parallel>], iteration_bounds = array<i64: 1>, scalar_prefetch = 0 : i64, scratch_operands = 0 : i64, tpu.core_type = #tpu.core_type<tc>, window_params = [{transform_indices = @transform_0, window_bounds = array<i64: 17, 128>}, {pipeline_mode = #tpu.pipeline_mode<synchronous>, transform_indices = @transform_1, window_bounds = array<i64: 32, 17>}, {pipeline_mode = #tpu.pipeline_mode<synchronous>, transform_indices = @transform_2, window_bounds = array<i64: 32, 1>}, {pipeline_mode = #tpu.pipeline_mode<synchronous>, transform_indices = @transform_3, window_bounds = array<i64: 32, 32>}, {pipeline_mode = #tpu.pipeline_mode<synchronous>, transform_indices = @transform_4, window_bounds = array<i64: 32, 1>}, {pipeline_mode = #tpu.pipeline_mode<synchronous>, transform_indices = @transform_5, window_bounds = array<i64: 32, 1>}, {pipeline_mode = #tpu.pipeline_mode<synchronous>, transform_indices = @transform_6, window_bounds = array<i64: 32, 1>}, {pipeline_mode = #tpu.pipeline_mode<synchronous>, transform_indices = @transform_7, window_bounds = array<i64: 32, 32>}, {pipeline_mode = #tpu.pipeline_mode<synchronous>, transform_indices = @transform_8, window_bounds = array<i64: 32, 1>}, {pipeline_mode = #tpu.pipeline_mode<synchronous>, transform_indices = @transform_9, window_bounds = array<i64: 10, 32>}, {pipeline_mode = #tpu.pipeline_mode<synchronous>, transform_indices = @transform_10, window_bounds = array<i64: 10, 1>}, {pipeline_mode = #tpu.pipeline_mode<synchronous>, transform_indices = @transform_11, window_bounds = array<i64: 32, 32>}, {pipeline_mode = #tpu.pipeline_mode<synchronous>, transform_indices = @transform_12, window_bounds = array<i64: 32, 1>}, {pipeline_mode = #tpu.pipeline_mode<synchronous>, transform_indices = @transform_13, window_bounds = array<i64: 3, 32, 32>}, {pipeline_mode = #tpu.pipeline_mode<synchronous>, transform_indices = @transform_14, window_bounds = array<i64: 3, 32, 1>}, {pipeline_mode = #tpu.pipeline_mode<synchronous>, transform_indices = @transform_15, window_bounds = array<i64: 8, 32>}, {pipeline_mode = #tpu.pipeline_mode<synchronous>, transform_indices = @transform_16, window_bounds = array<i64: 8, 1>}, {transform_indices = @transform_17, window_bounds = array<i64: 8, 128>}]} {
    %c0 = arith.constant 0 : index
    %c0_0 = arith.constant 0 : index
    %0 = vector.load %arg1[%c0, %c0_0] : memref<17x128xf32, #tpu.memory_space<vmem>>, vector<17x128xf32>
    %1 = vector.extract_strided_slice %0 {offsets = [16, 0], sizes = [1, 128], strides = [1, 1]} : vector<17x128xf32> to vector<1x128xf32>
    %c0_1 = arith.constant 0 : index
    %c0_2 = arith.constant 0 : index
    %2 = vector.load %arg2[%c0_1, %c0_2] : memref<32x17xf32, #tpu.memory_space<vmem>>, vector<32x17xf32>
    %cst = arith.constant dense<0.000000e+00> : vector<32x128xf32>
    %3 = tpu.matmul %2, %0, %cst {dimension_numbers = #tpu.dot_dimension_numbers<[1], [0], [0], [1], [0, 0, 1, 1], [], []>} : vector<32x17xf32>, vector<17x128xf32>, vector<32x128xf32> -> vector<32x128xf32>
    %c0_3 = arith.constant 0 : index
    %c0_4 = arith.constant 0 : index
    %4 = vector.load %arg3[%c0_3, %c0_4] : memref<32x1xf32, #tpu.memory_space<vmem>>, vector<32x1xf32>
    %5 = vector.broadcast %4 : vector<32x1xf32> to vector<32x128xf32>
    %6 = arith.addf %3, %5 : vector<32x128xf32>
    %cst_5 = arith.constant 0.000000e+00 : f32
    %7 = vector.broadcast %cst_5 : f32 to vector<32x128xf32>
    %8 = arith.maximumf %6, %7 : vector<32x128xf32>
    %c0_6 = arith.constant 0 : index
    %c0_7 = arith.constant 0 : index
    %9 = vector.load %arg4[%c0_6, %c0_7] : memref<32x32xf32, #tpu.memory_space<vmem>>, vector<32x32xf32>
    %cst_8 = arith.constant dense<0.000000e+00> : vector<32x128xf32>
    %10 = tpu.matmul %9, %8, %cst_8 {dimension_numbers = #tpu.dot_dimension_numbers<[1], [0], [0], [1], [0, 0, 1, 1], [], []>} : vector<32x32xf32>, vector<32x128xf32>, vector<32x128xf32> -> vector<32x128xf32>
    %c0_9 = arith.constant 0 : index
    %c0_10 = arith.constant 0 : index
    %11 = vector.load %arg5[%c0_9, %c0_10] : memref<32x1xf32, #tpu.memory_space<vmem>>, vector<32x1xf32>
    %12 = vector.broadcast %11 : vector<32x1xf32> to vector<32x128xf32>
    %13 = arith.addf %10, %12 : vector<32x128xf32>
    %c0_11 = arith.constant 0 : index
    %c0_12 = arith.constant 0 : index
    %14 = vector.load %arg6[%c0_11, %c0_12] : memref<32x1xf32, #tpu.memory_space<vmem>>, vector<32x1xf32>
    %15 = vector.broadcast %14 : vector<32x1xf32> to vector<32x128xf32>
    %16 = vector.broadcast %1 : vector<1x128xf32> to vector<32x128xf32>
    %17 = arith.mulf %15, %16 : vector<32x128xf32>
    %c0_13 = arith.constant 0 : index
    %c0_14 = arith.constant 0 : index
    %18 = vector.load %arg7[%c0_13, %c0_14] : memref<32x1xf32, #tpu.memory_space<vmem>>, vector<32x1xf32>
    %19 = vector.broadcast %18 : vector<32x1xf32> to vector<32x128xf32>
    %20 = arith.addf %17, %19 : vector<32x128xf32>
    %21 = arith.mulf %20, %13 : vector<32x128xf32>
    %cst_15 = arith.constant 0.000000e+00 : f32
    %22 = vector.broadcast %cst_15 : f32 to vector<32x128xf32>
    %23 = arith.maximumf %13, %22 : vector<32x128xf32>
    %c0_16 = arith.constant 0 : index
    %c0_17 = arith.constant 0 : index
    %24 = vector.load %arg8[%c0_16, %c0_17] : memref<32x32xf32, #tpu.memory_space<vmem>>, vector<32x32xf32>
    %cst_18 = arith.constant dense<0.000000e+00> : vector<32x128xf32>
    %25 = tpu.matmul %24, %21, %cst_18 {dimension_numbers = #tpu.dot_dimension_numbers<[1], [0], [0], [1], [0, 0, 1, 1], [], []>} : vector<32x32xf32>, vector<32x128xf32>, vector<32x128xf32> -> vector<32x128xf32>
    %c0_19 = arith.constant 0 : index
    %c0_20 = arith.constant 0 : index
    %26 = vector.load %arg9[%c0_19, %c0_20] : memref<32x1xf32, #tpu.memory_space<vmem>>, vector<32x1xf32>
    %27 = vector.broadcast %26 : vector<32x1xf32> to vector<32x128xf32>
    %28 = arith.addf %25, %27 : vector<32x128xf32>
    %cst_21 = arith.constant 0.000000e+00 : f32
    %29 = vector.broadcast %cst_21 : f32 to vector<32x128xf32>
    %30 = arith.maximumf %28, %29 : vector<32x128xf32>
    %c0_22 = arith.constant 0 : index
    %c0_23 = arith.constant 0 : index
    %31 = vector.load %arg10[%c0_22, %c0_23] : memref<10x32xf32, #tpu.memory_space<vmem>>, vector<10x32xf32>
    %cst_24 = arith.constant dense<0.000000e+00> : vector<10x128xf32>
    %32 = tpu.matmul %31, %30, %cst_24 {dimension_numbers = #tpu.dot_dimension_numbers<[1], [0], [0], [1], [0, 0, 1, 1], [], []>} : vector<10x32xf32>, vector<32x128xf32>, vector<10x128xf32> -> vector<10x128xf32>
    %c0_25 = arith.constant 0 : index
    %c0_26 = arith.constant 0 : index
    %33 = vector.load %arg11[%c0_25, %c0_26] : memref<10x1xf32, #tpu.memory_space<vmem>>, vector<10x1xf32>
    %34 = vector.broadcast %33 : vector<10x1xf32> to vector<10x128xf32>
    %35 = arith.addf %32, %34 : vector<10x128xf32>
    %c0_27 = arith.constant 0 : index
    %c0_28 = arith.constant 0 : index
    %36 = vector.load %arg12[%c0_27, %c0_28] : memref<32x32xf32, #tpu.memory_space<vmem>>, vector<32x32xf32>
    %cst_29 = arith.constant dense<0.000000e+00> : vector<32x128xf32>
    %37 = tpu.matmul %36, %23, %cst_29 {dimension_numbers = #tpu.dot_dimension_numbers<[1], [0], [0], [1], [0, 0, 1, 1], [], []>} : vector<32x32xf32>, vector<32x128xf32>, vector<32x128xf32> -> vector<32x128xf32>
    %c0_30 = arith.constant 0 : index
    %c0_31 = arith.constant 0 : index
    %38 = vector.load %arg13[%c0_30, %c0_31] : memref<32x1xf32, #tpu.memory_space<vmem>>, vector<32x1xf32>
    %39 = vector.broadcast %38 : vector<32x1xf32> to vector<32x128xf32>
    %40 = arith.addf %37, %39 : vector<32x128xf32>
    %cst_32 = arith.constant 0.000000e+00 : f32
    %41 = vector.broadcast %cst_32 : f32 to vector<32x128xf32>
    %42 = arith.maximumf %40, %41 : vector<32x128xf32>
    %c0_33 = arith.constant 0 : index
    %c0_34 = arith.constant 0 : index
    %c0_35 = arith.constant 0 : index
    %43 = vector.load %arg14[%c0_33, %c0_34, %c0_35] : memref<3x32x32xf32, #tpu.memory_space<vmem>>, vector<1x32x32xf32>
    %44 = vector.shape_cast %43 : vector<1x32x32xf32> to vector<32x32xf32>
    %cst_36 = arith.constant dense<0.000000e+00> : vector<32x128xf32>
    %45 = tpu.matmul %44, %42, %cst_36 {dimension_numbers = #tpu.dot_dimension_numbers<[1], [0], [0], [1], [0, 0, 1, 1], [], []>} : vector<32x32xf32>, vector<32x128xf32>, vector<32x128xf32> -> vector<32x128xf32>
    %c0_37 = arith.constant 0 : index
    %c0_38 = arith.constant 0 : index
    %c0_39 = arith.constant 0 : index
    %46 = vector.load %arg15[%c0_37, %c0_38, %c0_39] : memref<3x32x1xf32, #tpu.memory_space<vmem>>, vector<1x32x1xf32>
    %47 = vector.shape_cast %46 : vector<1x32x1xf32> to vector<32x1xf32>
    %48 = vector.broadcast %47 : vector<32x1xf32> to vector<32x128xf32>
    %49 = arith.addf %45, %48 : vector<32x128xf32>
    %cst_40 = arith.constant 0.000000e+00 : f32
    %50 = vector.broadcast %cst_40 : f32 to vector<32x128xf32>
    %51 = arith.maximumf %49, %50 : vector<32x128xf32>
    %52 = vector.extract_strided_slice %35 {offsets = [1, 0], sizes = [1, 128], strides = [1, 1]} : vector<10x128xf32> to vector<1x128xf32>
    %53 = vector.extract_strided_slice %35 {offsets = [2, 0], sizes = [1, 128], strides = [1, 1]} : vector<10x128xf32> to vector<1x128xf32>
    %54 = arith.maximumf %52, %53 : vector<1x128xf32>
    %55 = arith.subf %52, %54 : vector<1x128xf32>
    %56 = math.exp %55 : vector<1x128xf32>
    %57 = arith.subf %53, %54 : vector<1x128xf32>
    %58 = math.exp %57 : vector<1x128xf32>
    %59 = arith.addf %56, %58 : vector<1x128xf32>
    %60 = tpu.reciprocal %59 : vector<1x128xf32> -> vector<1x128xf32>
    %61 = arith.mulf %56, %60 : vector<1x128xf32>
    %62 = arith.mulf %58, %60 : vector<1x128xf32>
    %63 = vector.broadcast %61 : vector<1x128xf32> to vector<32x128xf32>
    %64 = arith.mulf %63, %42 : vector<32x128xf32>
    %65 = vector.broadcast %62 : vector<1x128xf32> to vector<32x128xf32>
    %66 = arith.mulf %65, %51 : vector<32x128xf32>
    %67 = arith.addf %64, %66 : vector<32x128xf32>
    %c1 = arith.constant 1 : index
    %c0_41 = arith.constant 0 : index
    %c0_42 = arith.constant 0 : index
    %68 = vector.load %arg14[%c1, %c0_41, %c0_42] : memref<3x32x32xf32, #tpu.memory_space<vmem>>, vector<1x32x32xf32>
    %69 = vector.shape_cast %68 : vector<1x32x32xf32> to vector<32x32xf32>
    %cst_43 = arith.constant dense<0.000000e+00> : vector<32x128xf32>
    %70 = tpu.matmul %69, %67, %cst_43 {dimension_numbers = #tpu.dot_dimension_numbers<[1], [0], [0], [1], [0, 0, 1, 1], [], []>} : vector<32x32xf32>, vector<32x128xf32>, vector<32x128xf32> -> vector<32x128xf32>
    %c1_44 = arith.constant 1 : index
    %c0_45 = arith.constant 0 : index
    %c0_46 = arith.constant 0 : index
    %71 = vector.load %arg15[%c1_44, %c0_45, %c0_46] : memref<3x32x1xf32, #tpu.memory_space<vmem>>, vector<1x32x1xf32>
    %72 = vector.shape_cast %71 : vector<1x32x1xf32> to vector<32x1xf32>
    %73 = vector.broadcast %72 : vector<32x1xf32> to vector<32x128xf32>
    %74 = arith.addf %70, %73 : vector<32x128xf32>
    %cst_47 = arith.constant 0.000000e+00 : f32
    %75 = vector.broadcast %cst_47 : f32 to vector<32x128xf32>
    %76 = arith.maximumf %74, %75 : vector<32x128xf32>
    %77 = vector.extract_strided_slice %35 {offsets = [3, 0], sizes = [1, 128], strides = [1, 1]} : vector<10x128xf32> to vector<1x128xf32>
    %78 = vector.extract_strided_slice %35 {offsets = [4, 0], sizes = [1, 128], strides = [1, 1]} : vector<10x128xf32> to vector<1x128xf32>
    %79 = vector.extract_strided_slice %35 {offsets = [5, 0], sizes = [1, 128], strides = [1, 1]} : vector<10x128xf32> to vector<1x128xf32>
    %80 = arith.maximumf %77, %78 : vector<1x128xf32>
    %81 = arith.maximumf %80, %79 : vector<1x128xf32>
    %82 = arith.subf %77, %81 : vector<1x128xf32>
    %83 = math.exp %82 : vector<1x128xf32>
    %84 = arith.subf %78, %81 : vector<1x128xf32>
    %85 = math.exp %84 : vector<1x128xf32>
    %86 = arith.subf %79, %81 : vector<1x128xf32>
    %87 = math.exp %86 : vector<1x128xf32>
    %88 = arith.addf %83, %85 : vector<1x128xf32>
    %89 = arith.addf %88, %87 : vector<1x128xf32>
    %90 = tpu.reciprocal %89 : vector<1x128xf32> -> vector<1x128xf32>
    %91 = arith.mulf %83, %90 : vector<1x128xf32>
    %92 = arith.mulf %85, %90 : vector<1x128xf32>
    %93 = arith.mulf %87, %90 : vector<1x128xf32>
    %94 = vector.broadcast %91 : vector<1x128xf32> to vector<32x128xf32>
    %95 = arith.mulf %94, %42 : vector<32x128xf32>
    %96 = vector.broadcast %92 : vector<1x128xf32> to vector<32x128xf32>
    %97 = arith.mulf %96, %51 : vector<32x128xf32>
    %98 = arith.addf %95, %97 : vector<32x128xf32>
    %99 = vector.broadcast %93 : vector<1x128xf32> to vector<32x128xf32>
    %100 = arith.mulf %99, %76 : vector<32x128xf32>
    %101 = arith.addf %98, %100 : vector<32x128xf32>
    %c2 = arith.constant 2 : index
    %c0_48 = arith.constant 0 : index
    %c0_49 = arith.constant 0 : index
    %102 = vector.load %arg14[%c2, %c0_48, %c0_49] : memref<3x32x32xf32, #tpu.memory_space<vmem>>, vector<1x32x32xf32>
    %103 = vector.shape_cast %102 : vector<1x32x32xf32> to vector<32x32xf32>
    %cst_50 = arith.constant dense<0.000000e+00> : vector<32x128xf32>
    %104 = tpu.matmul %103, %101, %cst_50 {dimension_numbers = #tpu.dot_dimension_numbers<[1], [0], [0], [1], [0, 0, 1, 1], [], []>} : vector<32x32xf32>, vector<32x128xf32>, vector<32x128xf32> -> vector<32x128xf32>
    %c2_51 = arith.constant 2 : index
    %c0_52 = arith.constant 0 : index
    %c0_53 = arith.constant 0 : index
    %105 = vector.load %arg15[%c2_51, %c0_52, %c0_53] : memref<3x32x1xf32, #tpu.memory_space<vmem>>, vector<1x32x1xf32>
    %106 = vector.shape_cast %105 : vector<1x32x1xf32> to vector<32x1xf32>
    %107 = vector.broadcast %106 : vector<32x1xf32> to vector<32x128xf32>
    %108 = arith.addf %104, %107 : vector<32x128xf32>
    %cst_54 = arith.constant 0.000000e+00 : f32
    %109 = vector.broadcast %cst_54 : f32 to vector<32x128xf32>
    %110 = arith.maximumf %108, %109 : vector<32x128xf32>
    %111 = vector.extract_strided_slice %35 {offsets = [6, 0], sizes = [1, 128], strides = [1, 1]} : vector<10x128xf32> to vector<1x128xf32>
    %112 = vector.extract_strided_slice %35 {offsets = [7, 0], sizes = [1, 128], strides = [1, 1]} : vector<10x128xf32> to vector<1x128xf32>
    %113 = vector.extract_strided_slice %35 {offsets = [8, 0], sizes = [1, 128], strides = [1, 1]} : vector<10x128xf32> to vector<1x128xf32>
    %114 = vector.extract_strided_slice %35 {offsets = [9, 0], sizes = [1, 128], strides = [1, 1]} : vector<10x128xf32> to vector<1x128xf32>
    %115 = arith.maximumf %111, %112 : vector<1x128xf32>
    %116 = arith.maximumf %115, %113 : vector<1x128xf32>
    %117 = arith.maximumf %116, %114 : vector<1x128xf32>
    %118 = arith.subf %111, %117 : vector<1x128xf32>
    %119 = math.exp %118 : vector<1x128xf32>
    %120 = arith.subf %112, %117 : vector<1x128xf32>
    %121 = math.exp %120 : vector<1x128xf32>
    %122 = arith.subf %113, %117 : vector<1x128xf32>
    %123 = math.exp %122 : vector<1x128xf32>
    %124 = arith.subf %114, %117 : vector<1x128xf32>
    %125 = math.exp %124 : vector<1x128xf32>
    %126 = arith.addf %119, %121 : vector<1x128xf32>
    %127 = arith.addf %126, %123 : vector<1x128xf32>
    %128 = arith.addf %127, %125 : vector<1x128xf32>
    %129 = tpu.reciprocal %128 : vector<1x128xf32> -> vector<1x128xf32>
    %130 = arith.mulf %119, %129 : vector<1x128xf32>
    %131 = arith.mulf %121, %129 : vector<1x128xf32>
    %132 = arith.mulf %123, %129 : vector<1x128xf32>
    %133 = arith.mulf %125, %129 : vector<1x128xf32>
    %134 = vector.broadcast %130 : vector<1x128xf32> to vector<32x128xf32>
    %135 = arith.mulf %134, %42 : vector<32x128xf32>
    %136 = vector.broadcast %131 : vector<1x128xf32> to vector<32x128xf32>
    %137 = arith.mulf %136, %51 : vector<32x128xf32>
    %138 = arith.addf %135, %137 : vector<32x128xf32>
    %139 = vector.broadcast %132 : vector<1x128xf32> to vector<32x128xf32>
    %140 = arith.mulf %139, %76 : vector<32x128xf32>
    %141 = arith.addf %138, %140 : vector<32x128xf32>
    %142 = vector.broadcast %133 : vector<1x128xf32> to vector<32x128xf32>
    %143 = arith.mulf %142, %110 : vector<32x128xf32>
    %144 = arith.addf %141, %143 : vector<32x128xf32>
    %c0_55 = arith.constant 0 : index
    %c0_56 = arith.constant 0 : index
    %145 = vector.load %arg16[%c0_55, %c0_56] : memref<8x32xf32, #tpu.memory_space<vmem>>, vector<8x32xf32>
    %cst_57 = arith.constant dense<0.000000e+00> : vector<8x128xf32>
    %146 = tpu.matmul %145, %144, %cst_57 {dimension_numbers = #tpu.dot_dimension_numbers<[1], [0], [0], [1], [0, 0, 1, 1], [], []>} : vector<8x32xf32>, vector<32x128xf32>, vector<8x128xf32> -> vector<8x128xf32>
    %c0_58 = arith.constant 0 : index
    %c0_59 = arith.constant 0 : index
    %147 = vector.load %arg17[%c0_58, %c0_59] : memref<8x1xf32, #tpu.memory_space<vmem>>, vector<8x1xf32>
    %148 = vector.broadcast %147 : vector<8x1xf32> to vector<8x128xf32>
    %149 = arith.addf %146, %148 : vector<8x128xf32>
    %c0_60 = arith.constant 0 : index
    %c0_61 = arith.constant 0 : index
    %150 = vector.load %arg18[%c0_60, %c0_61] : memref<8x128xf32, #tpu.memory_space<vmem>>, vector<8x128xf32>
    tpu.vector_store %arg18[%c0_60, %c0_61], %149 {strides = array<i32>} : memref<8x128xf32, #tpu.memory_space<vmem>>, vector<8x128xf32>,
    return
  }
  func.func @transform_0(%arg0: i32) -> (i32, i32) {
    %c0_i32 = arith.constant 0 : i32
    %c0_i32_0 = arith.constant 0 : i32
    return %c0_i32, %arg0 : i32, i32
  }
  func.func @transform_1(%arg0: i32) -> (i32, i32) {
    %c0_i32 = arith.constant 0 : i32
    %c0_i32_0 = arith.constant 0 : i32
    %c0_i32_1 = arith.constant 0 : i32
    return %c0_i32, %c0_i32_0 : i32, i32
  }
  func.func @transform_2(%arg0: i32) -> (i32, i32) {
    %c0_i32 = arith.constant 0 : i32
    %c0_i32_0 = arith.constant 0 : i32
    %c0_i32_1 = arith.constant 0 : i32
    return %c0_i32, %c0_i32_0 : i32, i32
  }
  func.func @transform_3(%arg0: i32) -> (i32, i32) {
    %c0_i32 = arith.constant 0 : i32
    %c0_i32_0 = arith.constant 0 : i32
    %c0_i32_1 = arith.constant 0 : i32
    return %c0_i32, %c0_i32_0 : i32, i32
  }
  func.func @transform_4(%arg0: i32) -> (i32, i32) {
    %c0_i32 = arith.constant 0 : i32
    %c0_i32_0 = arith.constant 0 : i32
    %c0_i32_1 = arith.constant 0 : i32
    return %c0_i32, %c0_i32_0 : i32, i32
  }
  func.func @transform_5(%arg0: i32) -> (i32, i32) {
    %c0_i32 = arith.constant 0 : i32
    %c0_i32_0 = arith.constant 0 : i32
    %c0_i32_1 = arith.constant 0 : i32
    return %c0_i32, %c0_i32_0 : i32, i32
  }
  func.func @transform_6(%arg0: i32) -> (i32, i32) {
    %c0_i32 = arith.constant 0 : i32
    %c0_i32_0 = arith.constant 0 : i32
    %c0_i32_1 = arith.constant 0 : i32
    return %c0_i32, %c0_i32_0 : i32, i32
  }
  func.func @transform_7(%arg0: i32) -> (i32, i32) {
    %c0_i32 = arith.constant 0 : i32
    %c0_i32_0 = arith.constant 0 : i32
    %c0_i32_1 = arith.constant 0 : i32
    return %c0_i32, %c0_i32_0 : i32, i32
  }
  func.func @transform_8(%arg0: i32) -> (i32, i32) {
    %c0_i32 = arith.constant 0 : i32
    %c0_i32_0 = arith.constant 0 : i32
    %c0_i32_1 = arith.constant 0 : i32
    return %c0_i32, %c0_i32_0 : i32, i32
  }
  func.func @transform_9(%arg0: i32) -> (i32, i32) {
    %c0_i32 = arith.constant 0 : i32
    %c0_i32_0 = arith.constant 0 : i32
    %c0_i32_1 = arith.constant 0 : i32
    return %c0_i32, %c0_i32_0 : i32, i32
  }
  func.func @transform_10(%arg0: i32) -> (i32, i32) {
    %c0_i32 = arith.constant 0 : i32
    %c0_i32_0 = arith.constant 0 : i32
    %c0_i32_1 = arith.constant 0 : i32
    return %c0_i32, %c0_i32_0 : i32, i32
  }
  func.func @transform_11(%arg0: i32) -> (i32, i32) {
    %c0_i32 = arith.constant 0 : i32
    %c0_i32_0 = arith.constant 0 : i32
    %c0_i32_1 = arith.constant 0 : i32
    return %c0_i32, %c0_i32_0 : i32, i32
  }
  func.func @transform_12(%arg0: i32) -> (i32, i32) {
    %c0_i32 = arith.constant 0 : i32
    %c0_i32_0 = arith.constant 0 : i32
    %c0_i32_1 = arith.constant 0 : i32
    return %c0_i32, %c0_i32_0 : i32, i32
  }
  func.func @transform_13(%arg0: i32) -> (i32, i32, i32) {
    %c0_i32 = arith.constant 0 : i32
    %c0_i32_0 = arith.constant 0 : i32
    %c0_i32_1 = arith.constant 0 : i32
    %c0_i32_2 = arith.constant 0 : i32
    return %c0_i32, %c0_i32_0, %c0_i32_1 : i32, i32, i32
  }
  func.func @transform_14(%arg0: i32) -> (i32, i32, i32) {
    %c0_i32 = arith.constant 0 : i32
    %c0_i32_0 = arith.constant 0 : i32
    %c0_i32_1 = arith.constant 0 : i32
    %c0_i32_2 = arith.constant 0 : i32
    return %c0_i32, %c0_i32_0, %c0_i32_1 : i32, i32, i32
  }
  func.func @transform_15(%arg0: i32) -> (i32, i32) {
    %c0_i32 = arith.constant 0 : i32
    %c0_i32_0 = arith.constant 0 : i32
    %c0_i32_1 = arith.constant 0 : i32
    return %c0_i32, %c0_i32_0 : i32, i32
  }
  func.func @transform_16(%arg0: i32) -> (i32, i32) {
    %c0_i32 = arith.constant 0 : i32
    %c0_i32_0 = arith.constant 0 : i32
    %c0_i32_1 = arith.constant 0 : i32
    return %c0_i32, %c0_i32_0 : i32, i32
  }
  func.func @transform_17(%arg0: i32) -> (i32, i32) {
    %c0_i32 = arith.constant 0 : i32
    %c0_i32_0 = arith.constant 0 : i32
    return %c0_i32, %arg0 : i32, i32
  }
}

</mosaic_0001>

<bundles_post_ra>
// kernel: tpu_custom_call.1
= control target key start
LH: loop header
LB: loop body
LE: loop exit
PB: predicated region body
PF: predicated region fallthrough
CT: control target
= control target key end

     0   :  { %s2225_s0 = inlined_call_operand.vmem [shape: f32[17,128], index: 0, kind: input, shape index: {}]   ;;  %s2226_s1 = inlined_call_operand.vmem [shape: f32[32,17], index: 1, kind: input, shape index: {}]   ;;  %s2227_s2 = inlined_call_operand.vmem [shape: f32[32,1], index: 2, kind: input, shape index: {}]   ;;  %s2228_s3 = inlined_call_operand.vmem [shape: f32[32,32], index: 3, kind: input, shape index: {}]   ;;  %s2229_s4 = inlined_call_operand.vmem [shape: f32[32,1], index: 4, kind: input, shape index: {}]   ;;  %s2230_s5 = inlined_call_operand.vmem [shape: f32[32,1], index: 5, kind: input, shape index: {}]   ;;  %s2231_s6 = inlined_call_operand.vmem [shape: f32[32,1], index: 6, kind: input, shape index: {}]   ;;  %s2232_s7 = inlined_call_operand.vmem [shape: f32[32,32], index: 7, kind: input, shape index: {}]   ;;  %s2233_s8 = inlined_call_operand.vmem [shape: f32[32,1], index: 8, kind: input, shape index: {}]   ;;  %s2234_s9 = inlined_call_operand.vmem [shape: f32[10,32], index: 9, kind: input, shape index: {}]   ;;  %s2235_s10 = inlined_call_operand.vmem [shape: f32[10,1], index: 10, kind: input, shape index: {}]   ;;  %s2236_s11 = inlined_call_operand.vmem [shape: f32[32,32], index: 11, kind: input, shape index: {}]   ;;  %s2237_s12 = inlined_call_operand.vmem [shape: f32[32,1], index: 12, kind: input, shape index: {}]   ;;  %s2238_s13 = inlined_call_operand.vmem [shape: f32[3,32,32], index: 13, kind: input, shape index: {}]   ;;  %s2239_s14 = inlined_call_operand.vmem [shape: f32[3,32,1], index: 14, kind: input, shape index: {}]   ;;  %s2240_s15 = inlined_call_operand.vmem [shape: f32[8,32], index: 15, kind: input, shape index: {}]   ;;  %s2241_s16 = inlined_call_operand.vmem [shape: f32[8,1], index: 16, kind: input, shape index: {}]   ;;  %s2242_s17 = inlined_call_operand.hbm [shape: f32[8,128], index: 17, kind: output, shape index: {}]  }
   0x1   :  { %2245 = sst [smem:[#allocation5_spill]] %s2225_s0 }
   0x2   :  { %2246 = sst [smem:[#allocation6_spill]] %s2226_s1 }
   0x3   :  { %s2247_s26 = sld [smem:[#allocation5_spill]]  ;;  %vm88_vm0 = vcmask 138240   ;;  %s2248_s30 = sld [smem:[#allocation6_spill]]  ;;  %vm101_vm1 = vcmask 1040384   ;;  %v1783_v5 = vmov 0   ;;  %v64_v6 = vld [vmem:[%s2227_s2] sm:$0xff] }
   0x4   :  { %1733 = vset.pattern.permute.xlu0 %v1783_v5  ;;  %v66_v7 = vld [vmem:[%s2227_s2 + $0x10] sm:$0xff]  ;;  %v65_v8 = vld [vmem:[%s2227_s2 + $0x8] sm:$0xff]  ;;  %1734 = vset.pattern.permute.xlu1 %v1783_v5  ;;  %v67_v10 = vld [vmem:[%s2227_s2 + $0x18] sm:$0xff] }
   0x5   :  { %70 = vperm.xlu0 %1733, %v64_v6   ;;  %80 = vperm.xlu1 %1734, %v66_v7   ;;  %v320_v12 = vld [vmem:[%s2230_s5] sm:$0xff]  ;;  %v321_v14 = vld [vmem:[%s2230_s5 + $0x8] sm:$0xff] }
   0x6   :  { %v198_v15 = vld [vmem:[%s2229_s4] sm:$0xff]  ;;  %v199_v16 = vld [vmem:[%s2229_s4 + $0x8] sm:$0xff] }
   0x9   :  { %v57_v0 = vld [vmem:[%s2247_s26] sm:$0xff]  ;;  %v58_v1 = vld [vmem:[%s2247_s26 + $0x8] sm:$0xff]  ;;  %v1890_v4 = vld [vmem:[%s2247_s26 + $0x10] sm:$0x1]  ;;  %75 = vperm.xlu0 %1733, %v65_v8   ;;  %85 = vperm.xlu1 %1734, %v67_v10  }
   0xa   :  { %v1662_v2 = vpack.c.bf16 %v58_v1, %v57_v0  ;;  %v60_v3 = vld [vmem:[%s2248_s30] sm:$0xff]  ;;  %v61_v9 = vld [vmem:[%s2248_s30 + $0x8] sm:$0xff]  ;;  %v62_v11 = vld [vmem:[%s2248_s30 + $0x10] sm:$0xff] }
   0xb   :  { %1550 = vmatprep.mubr.msk.f32.mxu0 %vm88_vm0, %v60_v3  ;;  %v63_v13 = vld [vmem:[%s2248_s30 + $0x18] sm:$0xff] }
   0xc   :  { %1663 = vmatprep.subr.bf16.mxu0 %v1662_v2 }
   0xd   :  { %1665 = vmatpush3.bf16.msra.mxu0 %v1662_v2  ;;  %326 = vperm.xlu0 %1733, %v320_v12  }
   0xe   :  { %1548 = vmatprep.subr.msk.mxu0 %vm101_vm1, %v1890_v4  ;;  %331 = vperm.xlu1 %1734, %v321_v14  }
  0x11   :  { %1549 = vmatpush3.msk.msra.mxu0 %vm101_vm1, %v1890_v4  ;;  %204 = vperm.xlu0 %1733, %v198_v15  }
  0x12   :  { %1551 = vmatmul.mubr.msk.f32.vlgmr.msra.gmra.mrb[0].mxu0 %vm88_vm0, %v61_v9 }
  0x13   :  { %1553 = vmatprep.mubr.msk.f32.mxu0 %vm88_vm0, %v62_v11 }
  0x16   :  { %1554 = vmatmul.mubr.msk.f32.gmra.mrb[2].mxu0 %vm88_vm0, %v63_v13 }
  0x17   :  { %22 = vsyncpa [#allocation3], 0  ;;  %v352_v17 = vld [vmem:[%s2231_s6] sm:$0xff]  ;;  %209 = vperm.xlu1 %1734, %v199_v16   ;;  %v353_v18 = vld [vmem:[%s2231_s6 + $0x8] sm:$0xff]  ;;  %vm222_vm2 = vcmask 261120   ;;  %v344_v12 = vlaneseq  ;;  %vm1785_vm3 = vmmov 0  }
  0x18   :  { %358 = vperm.xlu0 %1733, %v352_v17   ;;  %v322_v19 = vld [vmem:[%s2230_s5 + $0x10] sm:$0xff]  ;;  %v323_v20 = vld [vmem:[%s2230_s5 + $0x18] sm:$0xff]  ;;  %v392_v25 = vld [vmem:[%s2233_s8] sm:$0xff]  ;;  %s1787_s27 = smov [#allocation2]  }
  0x19   :  { %v200_v21 = vld [vmem:[%s2229_s4 + $0x10] sm:$0xff]  ;;  %v201_v22 = vld [vmem:[%s2229_s4 + $0x18] sm:$0xff]  ;;  %v393_v26 = vld [vmem:[%s2233_s8 + $0x8] sm:$0xff]  ;;  %v2046_v13 = vshrl.u32 %v344_v12, 7 }
  0x1a   :  { %v354_v23 = vld [vmem:[%s2231_s6 + $0x10] sm:$0xff]  ;;  %v355_v24 = vld [vmem:[%s2231_s6 + $0x18] sm:$0xff]  ;;  %v616_v29 = vld [vmem:[%s2237_s12] sm:$0xff] }
  0x1b   :  { %363 = vperm.xlu1 %1734, %v353_v18   ;;  %v394_v27 = vld [vmem:[%s2233_s8 + $0x10] sm:$0xff]  ;;  %v395_v28 = vld [vmem:[%s2233_s8 + $0x18] sm:$0xff]  ;;  %v617_v30 = vld [vmem:[%s2237_s12 + $0x8] sm:$0xff]  ;;  %v346_v16 = vsub.s32 0, %v2046_v13 }
  0x1c   :  { %336 = vperm.xlu0 %1733, %v322_v19   ;;  %v618_v31 = vld [vmem:[%s2237_s12 + $0x10] sm:$0xff]  ;;  %v619_v32 = vld [vmem:[%s2237_s12 + $0x18] sm:$0xff]  ;;  %v519_v33 = vld [vmem:[%s2235_s10] sm:$0xff] }
  0x1d   :  { %v745_v34 = vld [vmem:[%s2239_s14] sm:$0xff]  ;;  %v746_v35 = vld [vmem:[%s2239_s14 + $0x8] sm:$0xff]  ;;  %v747_v36 = vld [vmem:[%s2239_s14 + $0x10] sm:$0xff]  ;;  %v347_v19 = vrot.slane %v1890_v4, %v346_v16 }
  0x1e   :  { %v748_v37 = vld [vmem:[%s2239_s14 + $0x18] sm:$0xff]  ;;  %v1457_v38 = vld [vmem:[%s2239_s14 + $0x20] sm:$0xff]  ;;  %v1458_v39 = vld [vmem:[%s2239_s14 + $0x28] sm:$0xff] }
  0x1f   :  { %341 = vperm.xlu1 %1734, %v323_v20   ;;  %v1459_v40 = vld [vmem:[%s2239_s14 + $0x30] sm:$0xff]  ;;  %v1460_v41 = vld [vmem:[%s2239_s14 + $0x38] sm:$0xff]  ;;  %v520_v42 = vld [vmem:[%s2235_s10 + $0x8] sm:$0x3] }
  0x20   :  { %214 = vperm.xlu0 %1733, %v200_v21   ;;  %v1469_v43 = vld [vmem:[%s2239_s14 + $0x40] sm:$0xff]  ;;  %v1470_v44 = vld [vmem:[%s2239_s14 + $0x48] sm:$0xff]  ;;  %v1471_v45 = vld [vmem:[%s2239_s14 + $0x50] sm:$0xff] }
  0x21   :  { %v1472_v46 = vld [vmem:[%s2239_s14 + $0x58] sm:$0xff]  ;;  %v1336_v47 = vld [vmem:[%s2241_s16] sm:$0xff]  ;;  %v195_v3 = vld [vmem:[%s2228_s3 + $0x8] sm:$0xff] }
  0x22   :  { %v194_v48 = vld [vmem:[%s2228_s3] sm:$0xff]  ;;  %v196_v5 = vld [vmem:[%s2228_s3 + $0x10] sm:$0xff]  ;;  %v197_v6 = vld [vmem:[%s2228_s3 + $0x18] sm:$0xff] }
  0x23   :  { %219 = vperm.xlu1 %1734, %v201_v22   ;;  %1564 = vmatprep.mubr.msk.f32.mxu1 %vm222_vm2, %v194_v48  ;;  %v388_v7 = vld [vmem:[%s2232_s7] sm:$0xff] }
  0x24   :  { %368 = vperm.xlu0 %1733, %v354_v23   ;;  %1578 = vmatprep.mubr.msk.f32.mxu0 %vm222_vm2, %v388_v7 }
  0x27   :  { %373 = vperm.xlu1 %1734, %v355_v24  }
  0x28   :  { %398 = vperm.xlu0 %1733, %v392_v25  }
  0x2b   :  { %403 = vperm.xlu1 %1734, %v393_v26  }
  0x2c   :  { %408 = vperm.xlu0 %1733, %v394_v27  }
  0x2f   :  { %413 = vperm.xlu1 %1734, %v395_v28  }
  0x30   :  { %622 = vperm.xlu0 %1733, %v616_v29  }
  0x33   :  { %627 = vperm.xlu1 %1734, %v617_v30  }
  0x34   :  { %632 = vperm.xlu0 %1733, %v618_v31  }
  0x37   :  { %637 = vperm.xlu1 %1734, %v619_v32  }
  0x38   :  { %523 = vperm.xlu0 %1733, %v519_v33  }
  0x3b   :  { %751 = vperm.xlu1 %1734, %v745_v34  }
  0x3c   :  { %756 = vperm.xlu0 %1733, %v746_v35  }
  0x3f   :  { %761 = vperm.xlu1 %1734, %v747_v36  }
  0x40   :  { %766 = vperm.xlu0 %1733, %v748_v37  }
  0x43   :  { %925 = vperm.xlu1 %1734, %v1457_v38  }
  0x44   :  { %930 = vperm.xlu0 %1733, %v1458_v39  }
  0x47   :  { %935 = vperm.xlu1 %1734, %v1459_v40  }
  0x48   :  { %940 = vperm.xlu0 %1733, %v1460_v41  }
  0x4b   :  { %528 = vperm.xlu1 %1734, %v520_v42  }
  0x4c   :  { %1122 = vperm.xlu0 %1733, %v1469_v43  }
  0x4f   :  { %1127 = vperm.xlu1 %1734, %v1470_v44  }
  0x50   :  { %1132 = vperm.xlu0 %1733, %v1471_v45  }
  0x53   :  { %1137 = vperm.xlu1 %1734, %v1472_v46  }
  0x54   :  { %1339 = vperm.xlu0 %1733, %v1336_v47  }
  0x84   :  { %v71_v49 = vpop.permute.xlu0 %70  ;;  %v81_v50 = vpop.permute.xlu1 %80 }
  0x88   :  { %v76_v51 = vpop.permute.xlu0 %75  ;;  %v86_v57 = vpop.permute.xlu1 %85 }
  0x8c   :  { %v327_v9 = vpop.permute.xlu0 %326 }
  0x8d   :  { %v332_v8 = vpop.permute.xlu1 %331  ;;  %v348_v21 = vmul.f32 %v347_v19, %v327_v9 }
  0x8e   :  { %v349_v20 = vmul.f32 %v347_v19, %v332_v8 }
  0x90   :  { %v205_v11 = vpop.permute.xlu0 %204 }
  0x96   :  { %v210_v10 = vpop.permute.xlu1 %209 }
  0x97   :  { %v359_v15 = vpop.permute.xlu0 %358 }
  0x98   :  { %v376_v29 = vadd.f32 %v359_v15, %v348_v21 }
  0x9a   :  { %v364_v14 = vpop.permute.xlu1 %363 }
  0x9b   :  { %v337_v18 = vpop.permute.xlu0 %336  ;;  %v377_v25 = vadd.f32 %v364_v14, %v349_v20 }
  0x9c   :  { %v350_v30 = vmul.f32 %v347_v19, %v337_v18 }
  0x9e   :  { %v342_v17 = vpop.permute.xlu1 %341 }
  0x9f   :  { %v215_v23 = vpop.permute.xlu0 %214  ;;  %v351_v26 = vmul.f32 %v347_v19, %v342_v17 }
  0xa2   :  { %v220_v22 = vpop.permute.xlu1 %219 }
  0xa3   :  { %v369_v38 = vpop.permute.xlu0 %368 }
  0xa4   :  { %v378_v41 = vadd.f32 %v369_v38, %v350_v30  ;;  %v744_v38 = vld [vmem:[%s2238_s13 + $0x18] sm:$0xff] }
  0xa6   :  { %v374_v34 = vpop.permute.xlu1 %373 }
  0xa7   :  { %v379_v4 = vadd.f32 %v374_v34, %v351_v26 }
  0xe5   :  { %v1552_v52 = vpop.f32.mrb[0].mxu0 }
  0xe6   :  { %v177_v53 = vadd.f32 %v1552_v52, %v76_v51  ;;  %v171_v54 = vpop.f32.mrb[1].mxu0  ;;  %v389_v51 = vld [vmem:[%s2232_s7 + $0x8] sm:$0xff]  ;;  %v390_v52 = vld [vmem:[%s2232_s7 + $0x10] sm:$0xff] }
  0xe7   :  { %v172_v55 = vadd.f32 %v171_v54, %v71_v49  ;;  %v612_v54 = vld [vmem:[%s2236_s11] sm:$0xff] }
  0xe8   :  { %v191_v56 = vmax.f32 %v177_v53, 0.0  ;;  %v391_v53 = vld [vmem:[%s2232_s7 + $0x18] sm:$0xff] }
  0xe9   :  { %v190_v58 = vmax.f32 %v172_v55, 0.0  ;;  %v1555_v59 = vpop.f32.mrb[2].mxu0  ;;  %v613_v55 = vld [vmem:[%s2236_s11 + $0x8] sm:$0xff] }
  0xea   :  { %v187_v60 = vadd.f32 %v1555_v59, %v86_v57  ;;  %v181_v61 = vpop.f32.mrb[3].mxu0  ;;  %v615_v57 = vld [vmem:[%s2236_s11 + $0x18] sm:$0xff]  ;;  %v404_v59 = vpop.permute.xlu1 %403 }
  0xeb   :  { %v182_v62 = vadd.f32 %v181_v61, %v81_v50  ;;  %v1666_v63 = vpack.c.bf16 %v191_v56, %v190_v58  ;;  %v614_v56 = vld [vmem:[%s2236_s11 + $0x10] sm:$0xff]  ;;  %v517_v58 = vld [vmem:[%s2234_s9] sm:$0xff]  ;;  %s1422_s11 = sshll.u32 %s1787_s27, 4  ;;  %s1423_s11 = int_to_ptr.vmem [resolvable:$true] %s1422_s11 }
  0xec   :  { %v193_v0 = vmax.f32 %v187_v60, 0.0  ;;  %v399_v60 = vpop.permute.xlu0 %398  ;;  %s1759_s12 = scalar_lea.vmem %s1423_s11, 128  ;;  %p1764_p1 = scmp.lt.s32.totalorder %s1423_s11, %s1423_s11 }
  0xed   :  { %v192_v1 = vmax.f32 %v182_v62, 0.0  ;;  %1667 = vmatprep.subr.bf16.mxu1 %v1666_v63  ;;  %p1760_p0 = scmp.ne.s32.totalorder %s1423_s11, %s1759_s12  ;;  %p1765_p2 = scmp.lt.s32.totalorder %s1759_s12, %s1759_s12 }
  0xee   :  { %1669 = vmatpush3.bf16.msra.mxu1 %v1666_v63  ;;  %v414_v61 = vpop.permute.xlu1 %413 }
  0xef   :  { %v1670_v2 = vpack.c.bf16 %v193_v0, %v192_v1  ;;  %p1766_p3 = por %p1765_p2, %p1764_p1 }
  0xf0   :  { %v409_v63 = vpop.permute.xlu0 %408 }
  0xf1   :  { %1671 = vmatprep.subr.bf16.mxu1 %v1670_v2  ;;  %p1767_p4 = pnand %p1766_p3, %p1760_p0 }
  0xf2   :  { %1673 = vmatpush3.bf16.msra.mxu1 %v1670_v2  ;;  %v628_v9 = vpop.permute.xlu1 %627 }
  0xf4   :  { %v623_v12 = vpop.permute.xlu0 %622 }
  0xf5   :  { %1565 = vmatmul.mubr.msk.f32.vlgmr.msra.gmra.mrb[0].mxu1 %vm222_vm2, %v195_v3 }
  0xf6   :  { %1567 = vmatprep.mubr.msk.f32.mxu1 %vm222_vm2, %v196_v5 }
  0xf8   :  { %v633_v26 = vpop.permute.xlu0 %632 }
  0xf9   :  { %1568 = vmatmul.mubr.msk.f32.gmra.mrb[2].mxu1 %vm222_vm2, %v197_v6 }
  0xfa   :  { %1592 = vmatprep.mubr.msk.f32.mxu1 %vm222_vm2, %v517_v58 }
 0x1c8   :  { %v1566_v24 = vpop.f32.mrb[0].mxu1 }
 0x1c9   :  { %v307_v27 = vadd.f32 %v1566_v24, %v210_v10  ;;  %v301_v28 = vpop.f32.mrb[1].mxu1 }
 0x1ca   :  { %v302_v31 = vadd.f32 %v301_v28, %v205_v11 }
 0x1cb   :  { %v381_v32 = vmul.f32 %v377_v25, %v307_v27  ;;  %v385_v33 = vmax.f32 %v307_v27, 0.0 }
 0x1cc   :  { %v380_v35 = vmul.f32 %v376_v29, %v302_v31  ;;  %v384_v36 = vmax.f32 %v302_v31, 0.0  ;;  %v1569_v37 = vpop.f32.mrb[2].mxu1  ;;  %v518_v29 = vld [vmem:[%s2234_s9 + $0x8] sm:$0x3] }
 0x1cd   :  { %v317_v39 = vadd.f32 %v1569_v37, %v220_v22  ;;  %v311_v40 = vpop.f32.mrb[3].mxu1  ;;  %v743_v37 = vld [vmem:[%s2238_s13 + $0x10] sm:$0xff] }
 0x1ce   :  { %v312_v42 = vadd.f32 %v311_v40, %v215_v23  ;;  %v1674_v43 = vpack.c.bf16 %v381_v32, %v380_v35  ;;  %v1690_v44 = vpack.c.bf16 %v385_v33, %v384_v36  ;;  %v638_v23 = vpop.permute.xlu1 %637  ;;  %v741_v32 = vld [vmem:[%s2238_s13] sm:$0xff]  ;;  %v742_v36 = vld [vmem:[%s2238_s13 + $0x8] sm:$0xff] }
 0x1cf   :  { %v383_v45 = vmul.f32 %v379_v4, %v317_v39  ;;  %v387_v46 = vmax.f32 %v317_v39, 0.0  ;;  %v1453_v4 = vld [vmem:[%s2238_s13 + $0x20] sm:$0xff] }
 0x1d0   :  { %v382_v47 = vmul.f32 %v378_v41, %v312_v42  ;;  %v386_v48 = vmax.f32 %v312_v42, 0.0  ;;  %1675 = vmatprep.subr.bf16.mxu0 %v1674_v43 }
 0x1d1   :  { %1677 = vmatpush3.bf16.msra.mxu0 %v1674_v43  ;;  %v524_v43 = vpop.permute.xlu0 %523 }
 0x1d2   :  { %v1678_v49 = vpack.c.bf16 %v383_v45, %v382_v47  ;;  %v1694_v50 = vpack.c.bf16 %v387_v46, %v386_v48  ;;  %v2120_v39 = vpop.permute.xlu1 %751 }
 0x1d4   :  { %1679 = vmatprep.subr.bf16.mxu0 %v1678_v49 }
 0x1d5   :  { %1681 = vmatpush3.bf16.msra.mxu0 %v1678_v49 }
 0x1d6   :  { %1691 = vmatprep.subr.bf16.mxu0 %v1690_v44  ;;  %v2122_v40 = vpop.permute.xlu1 %761 }
 0x1d8   :  { %1579 = vmatmul.mubr.msk.f32.vlgmr.msra.gmra.mrb[4].mxu0 %vm222_vm2, %v389_v51 }
 0x1d9   :  { %1693 = vmatpush3.bf16.msra.mxu0 %v1690_v44  ;;  %1581 = vmatprep.mubr.msk.f32.mxu0 %vm222_vm2, %v390_v52 }
 0x1da   :  { %1695 = vmatprep.subr.bf16.mxu0 %v1694_v50  ;;  %v2124_v41 = vpop.permute.xlu1 %925 }
 0x1dc   :  { %1582 = vmatmul.mubr.msk.f32.gmra.mrb[6].mxu0 %vm222_vm2, %v391_v53 }
 0x1dd   :  { %1697 = vmatpush3.bf16.msra.mxu0 %v1694_v50  ;;  %1603 = vmatprep.mubr.msk.f32.mxu0 %vm222_vm2, %v612_v54 }
 0x1de   :  { %v2126_v42 = vpop.permute.xlu1 %935 }
 0x1e0   :  { %1604 = vmatmul.mubr.msk.f32.vlgmr.msra.gmra.mrb[8].mxu0 %vm222_vm2, %v613_v55 }
 0x1e1   :  { %1606 = vmatprep.mubr.msk.f32.mxu0 %vm222_vm2, %v614_v56 }
 0x1e2   :  { %v529_v45 = vpop.permute.xlu1 %528 }
 0x1e4   :  { %1607 = vmatmul.mubr.msk.f32.gmra.mrb[10].mxu0 %vm222_vm2, %v615_v57 }
 0x1e5   :  { %1631 = vmatprep.mubr.msk.f32.mxu0 %vm222_vm2, %v1453_v4 }
 0x2ab   :  { %v1580_v62 = vpop.f32.mrb[4].mxu0 }
 0x2ac   :  { %v500_v0 = vadd.f32 %v1580_v62, %v404_v59  ;;  %v494_v1 = vpop.f32.mrb[5].mxu0 }
 0x2ad   :  { %v495_v2 = vadd.f32 %v494_v1, %v399_v60 }
 0x2ae   :  { %v514_v3 = vmax.f32 %v500_v0, 0.0 }
 0x2af   :  { %v513_v5 = vmax.f32 %v495_v2, 0.0  ;;  %v1583_v6 = vpop.f32.mrb[6].mxu0 }
 0x2b0   :  { %v510_v7 = vadd.f32 %v1583_v6, %v414_v61  ;;  %v504_v8 = vpop.f32.mrb[7].mxu0 }
 0x2b1   :  { %v1682_v10 = vpack.c.bf16 %v514_v3, %v513_v5  ;;  %v505_v11 = vadd.f32 %v504_v8, %v409_v63 }
 0x2b2   :  { %v516_v14 = vmax.f32 %v510_v7, 0.0 }
 0x2b3   :  { %v515_v15 = vmax.f32 %v505_v11, 0.0  ;;  %1683 = vmatprep.subr.bf16.mxu1 %v1682_v10  ;;  %v1605_v17 = vpop.f32.mrb[8].mxu0 }
 0x2b4   :  { %v724_v18 = vadd.f32 %v1605_v17, %v628_v9  ;;  %1685 = vmatpush3.bf16.msra.mxu1 %v1682_v10  ;;  %v718_v19 = vpop.f32.mrb[9].mxu0 }
 0x2b5   :  { %v1686_v20 = vpack.c.bf16 %v516_v14, %v515_v15  ;;  %v719_v21 = vadd.f32 %v718_v19, %v623_v12 }
 0x2b6   :  { %v2084_v22 = vmax.f32 %v724_v18, 0.0 }
 0x2b7   :  { %v2086_v24 = vmax.f32 %v719_v21, 0.0  ;;  %1687 = vmatprep.subr.bf16.mxu1 %v1686_v20  ;;  %v1608_v25 = vpop.f32.mrb[10].mxu0 }
 0x2b8   :  { %v734_v27 = vadd.f32 %v1608_v25, %v638_v23  ;;  %1689 = vmatpush3.bf16.msra.mxu1 %v1686_v20  ;;  %v728_v28 = vpop.f32.mrb[11].mxu0 }
 0x2b9   :  { %v729_v30 = vadd.f32 %v728_v28, %v633_v26  ;;  %v1698_v31 = vpack.c.bf16 %v2084_v22, %v2086_v24 }
 0x2ba   :  { %v2096_v33 = vmax.f32 %v734_v27, 0.0 }
 0x2bb   :  { %v2098_v34 = vmax.f32 %v729_v30, 0.0  ;;  %1593 = vmatmul.mubr.msk.f32.vlgmr.msra.gmra.mrb[4].mxu1 %vm222_vm2, %v518_v29  ;;  %1699 = vmatprep.subr.bf16.mxu1 %v1698_v31 }
 0x2bc   :  { %1701 = vmatpush3.bf16.msra.mxu1 %v1698_v31  ;;  %1617 = vmatprep.mubr.msk.f32.mxu1 %vm222_vm2, %v741_v32 }
 0x2bd   :  { %v1702_v35 = vpack.c.bf16 %v2096_v33, %v2098_v34 }
 0x2bf   :  { %1703 = vmatprep.subr.bf16.mxu1 %v1702_v35 }
 0x2c0   :  { %1705 = vmatpush3.bf16.msra.mxu1 %v1702_v35 }
 0x2c3   :  { %1618 = vmatmul.mubr.msk.f32.vlgmr.msra.gmra.mrb[6].mxu1 %vm222_vm2, %v742_v36 }
 0x2c4   :  { %1620 = vmatprep.mubr.msk.f32.mxu1 %vm222_vm2, %v743_v37 }
 0x2c7   :  { %1621 = vmatmul.mubr.msk.f32.gmra.mrb[8].mxu1 %vm222_vm2, %v744_v38 }
 0x38e   :  { %v1594_v44 = vpop.f32.mrb[4].mxu1 }
 0x38f   :  { %v603_v46 = vpop.f32.mrb[5].mxu1  ;;  %v609_v47 = vadd.f32 %v1594_v44, %v529_v45 }
 0x390   :  { %v604_v48 = vadd.f32 %v603_v46, %v524_v43  ;;  %v757_v46 = vpop.permute.xlu0 %756 }
 0x391   :  { %v1242_v50 = vrot.slane %v609_v47, 2  ;;  %v1245_v53 = vrot.slane %v609_v47, 3 }
 0x392   :  { %v871_v49 = vrot.slane %v604_v48, 1  ;;  %v1044_v52 = vrot.slane %v604_v48, 2 }
 0x394   :  { %v873_v51 = vmax.f32 %v604_v48, %v871_v49 }
 0x396   :  { %v1046_v54 = vmax.f32 %v873_v51, %v1044_v52  ;;  %v1244_v55 = vmax.f32 %v873_v51, %v1242_v50  ;;  %v2128_v56 = vpop.f32.mrb[6].mxu1  ;;  %v874_v57 = vsub.f32 %v604_v48, %v873_v51  ;;  %v878_v58 = vrot.slane %v873_v51, 7 }
 0x397   :  { %v2130_v59 = vpop.f32.mrb[7].mxu1 }
 0x398   :  { %v1047_v60 = vsub.f32 %v604_v48, %v1046_v54  ;;  %v1056_v61 = vrot.slane %v1046_v54, 6  ;;  %v1247_v62 = vmax.f32 %v1244_v55, %v1245_v53  ;;  %v880_v63 = vsub.f32 %v604_v48, %v878_v58  ;;  %v767_v55 = vpop.permute.xlu0 %766 }
 0x399   :  { %v1051_v0 = vrot.slane %v1046_v54, 7  ;;  %v875_v5 = vmul.f32 1.442695, %v874_v57  ;;  %v895_v53 = vsub.s32 1, %v2046_v13  ;;  %v853_v57 = vadd.f32 %v2128_v56, %v757_v46 }
 0x39a   :  { %v1058_v1 = vsub.f32 %v604_v48, %v1056_v61  ;;  %v1248_v2 = vsub.f32 %v604_v48, %v1247_v62  ;;  %v1257_v3 = vrot.slane %v1247_v62, 6  ;;  %v1622_v6 = vpop.f32.mrb[8].mxu1  ;;  %v1048_v7 = vmul.f32 1.442695, %v1047_v60 }
 0x39b   :  { %v1262_v8 = vrot.slane %v1247_v62, 5  ;;  %v881_v9 = vmul.f32 1.442695, %v880_v63  ;;  %v1053_v10 = vsub.f32 %v604_v48, %v1051_v0  ;;  %v857_v11 = vpop.f32.mrb[9].mxu1  ;;  %v1252_v17 = vrot.slane %v1247_v62, 7 }
 0x39c   :  { %v1059_v12 = vmul.f32 1.442695, %v1058_v1  ;;  %v1259_v14 = vsub.f32 %v609_v47, %v1257_v3  ;;  %v1249_v21 = vmul.f32 1.442695, %v1248_v2  ;;  %v903_v58 = vsub.s32 2, %v2046_v13 }
 0x39d   :  { %v1264_v15 = vsub.f32 %v609_v47, %v1262_v8  ;;  %1735 = vpow2.f32 %v881_v9  ;;  %v1054_v19 = vmul.f32 1.442695, %v1053_v10  ;;  %v1254_v20 = vsub.f32 %v604_v48, %v1252_v17 }
 0x39e   :  { %v1260_v18 = vmul.f32 1.442695, %v1259_v14  ;;  %1737 = vpow2.f32 %v875_v5  ;;  %v848_v60 = vadd.f32 %v2130_v59, %v2120_v39  ;;  %v863_v62 = vadd.f32 %v1622_v6, %v767_v55 }
 0x39f   :  { %1739 = vpow2.f32 %v1048_v7  ;;  %v1265_v23 = vmul.f32 1.442695, %v1264_v15  ;;  %v1255_v25 = vmul.f32 1.442695, %v1254_v20  ;;  %v858_v63 = vadd.f32 %v857_v11, %v2122_v40 }
 0x3a0   :  { %1741 = vpow2.f32 %v1059_v12  ;;  %v867_v3 = vmax.f32 %v853_v57, 0.0  ;;  %v1088_v5 = vsub.s32 4, %v2046_v13  ;;  %v1080_v56 = vsub.s32 3, %v2046_v13 }
 0x3a1   :  { %1743 = vpow2.f32 %v1260_v18  ;;  %v866_v8 = vmax.f32 %v848_v60, 0.0  ;;  %v869_v9 = vmax.f32 %v863_v62, 0.0  ;;  %v868_v10 = vmax.f32 %v858_v63, 0.0 }
 0x3a2   :  { %1745 = vpow2.f32 %v1054_v19 }
 0x3a3   :  { %1747 = vpow2.f32 %v1255_v25 }
 0x3a4   :  { %1749 = vpow2.f32 %v1249_v21  ;;  %v1293_v21 = vsub.s32 6, %v2046_v13 }
 0x3a5   :  { %1751 = vpow2.f32 %v1265_v23 }
 0x3a7   :  { %v1736_v26 = vpop.eup %1735 }
 0x3a8   :  { %v1738_v27 = vpop.eup %1737  ;;  %v884_v28 = vrot.slane %v1736_v26, 1 }
 0x3a9   :  { %v1740_v29 = vpop.eup %1739 }
 0x3aa   :  { %v1742_v30 = vpop.eup %1741  ;;  %v886_v31 = vadd.f32 %v1738_v27, %v884_v28 }
 0x3ab   :  { %v2132_v32 = vpop.eup %1743  ;;  %v1066_v45 = vrot.slane %v1742_v30, 2 }
 0x3ac   :  { %v1746_v35 = vpop.eup %1745  ;;  %1753 = vrcp.f32 %v886_v31  ;;  %v1272_v48 = vrot.slane %v2132_v32, 2 }
 0x3ad   :  { %v2134_v36 = vpop.eup %1747  ;;  %v1062_v37 = vrot.slane %v1746_v35, 1 }
 0x3ae   :  { %v1750_v38 = vpop.eup %1749  ;;  %v1268_v4 = vrot.slane %v2134_v36, 1 }
 0x3af   :  { %v2137_v43 = vpop.eup %1751  ;;  %v1064_v44 = vadd.f32 %v1740_v29, %v1062_v37  ;;  %v1301_v37 = vsub.s32 7, %v2046_v13 }
 0x3b0   :  { %v1270_v47 = vadd.f32 %v1750_v38, %v1268_v4  ;;  %v1276_v51 = vrot.slane %v2137_v43, 3 }
 0x3b1   :  { %v1068_v49 = vadd.f32 %v1066_v45, %v1064_v44 }
 0x3b2   :  { %v1274_v50 = vadd.f32 %v1272_v48, %v1270_v47 }
 0x3b3   :  { %1755 = vrcp.f32 %v1068_v49 }
 0x3b4   :  { %v1278_v52 = vadd.f32 %v1276_v51, %v1274_v50 }
 0x3b6   :  { %v1754_v54 = vpop.eup %1753  ;;  %1757 = vrcp.f32 %v1278_v52 }
 0x3b7   :  { %v890_v61 = vrot.slane %v1754_v54, 7  ;;  %v888_v0 = vmul.f32 %v1754_v54, %v1738_v27 }
 0x3b9   :  { %v892_v1 = vmul.f32 %v1736_v26, %v890_v61  ;;  %v896_v2 = vrot.slane %v888_v0, %v895_v53 }
 0x3bb   :  { %v904_v7 = vrot.slane %v892_v1, %v903_v58  ;;  %v897_v39 = vmul.f32 %v896_v2, %v2086_v24  ;;  %v898_v59 = vmul.f32 %v896_v2, %v2084_v22  ;;  %v899_v40 = vmul.f32 %v896_v2, %v2098_v34 }
 0x3bc   :  { %v900_v6 = vmul.f32 %v896_v2, %v2096_v33 }
 0x3bd   :  { %v1756_v11 = vpop.eup %1755  ;;  %v906_v12 = vmul.f32 %v904_v7, %v867_v3  ;;  %v905_v14 = vmul.f32 %v904_v7, %v866_v8  ;;  %v908_v15 = vmul.f32 %v904_v7, %v869_v9  ;;  %v907_v17 = vmul.f32 %v904_v7, %v868_v10 }
 0x3be   :  { %v1072_v18 = vrot.slane %v1756_v11, 7  ;;  %v1070_v19 = vmul.f32 %v1756_v11, %v1740_v29  ;;  %v1075_v20 = vrot.slane %v1756_v11, 6  ;;  %v1465_v11 = vld [vmem:[%s2238_s13 + $0x40] sm:$0xff] }
 0x3bf   :  { %v909_v23 = vadd.f32 %v905_v14, %v897_v39  ;;  %v910_v25 = vadd.f32 %v906_v12, %v898_v59  ;;  %v911_v26 = vadd.f32 %v907_v17, %v899_v40  ;;  %v912_v27 = vadd.f32 %v908_v15, %v900_v6  ;;  %v1454_v39 = vld [vmem:[%s2238_s13 + $0x28] sm:$0xff]  ;;  %1645 = vmatprep.mubr.msk.f32.mxu1 %vm222_vm2, %v1465_v11 }
 0x3c0   :  { %v1758_v28 = vpop.eup %1757  ;;  %v1074_v31 = vmul.f32 %v1746_v35, %v1072_v18  ;;  %v1077_v4 = vmul.f32 %v1742_v30, %v1075_v20  ;;  %v1081_v44 = vrot.slane %v1070_v19, %v1080_v56  ;;  %v1100_v12 = vsub.s32 5, %v2046_v13 }
 0x3c1   :  { %v1282_v45 = vrot.slane %v1758_v28, 7  ;;  %v1706_v46 = vpack.c.bf16 %v910_v25, %v909_v23  ;;  %v1710_v47 = vpack.c.bf16 %v912_v27, %v911_v26  ;;  %v1280_v48 = vmul.f32 %v1758_v28, %v1750_v38 }
 0x3c2   :  { %v1089_v49 = vrot.slane %v1074_v31, %v1088_v5  ;;  %v1083_v29 = vmul.f32 %v1081_v44, %v2084_v22  ;;  %v1285_v50 = vrot.slane %v1758_v28, 6  ;;  %v1082_v54 = vmul.f32 %v1081_v44, %v2086_v24 }
 0x3c3   :  { %v1284_v51 = vmul.f32 %v2134_v36, %v1282_v45  ;;  %1707 = vmatprep.subr.bf16.mxu0 %v1706_v46  ;;  %v1294_v52 = vrot.slane %v1280_v48, %v1293_v21  ;;  %v1085_v35 = vmul.f32 %v1081_v44, %v2096_v33  ;;  %v1288_v59 = vrot.slane %v1758_v28, 5 }
 0x3c4   :  { %v1091_v55 = vmul.f32 %v1089_v49, %v867_v3  ;;  %v1090_v57 = vmul.f32 %v1089_v49, %v866_v8  ;;  %v1093_v30 = vmul.f32 %v1089_v49, %v869_v9  ;;  %v1092_v58 = vmul.f32 %v1089_v49, %v868_v10  ;;  %1709 = vmatpush3.bf16.msra.mxu0 %v1706_v46 }
 0x3c5   :  { %v1302_v60 = vrot.slane %v1284_v51, %v1301_v37  ;;  %1711 = vmatprep.subr.bf16.mxu0 %v1710_v47  ;;  %v1287_v38 = vmul.f32 %v2132_v32, %v1285_v50  ;;  %v1296_v61 = vmul.f32 %v1294_v52, %v2084_v22  ;;  %v1295_v62 = vmul.f32 %v1294_v52, %v2086_v24  ;;  %v1455_v24 = vld [vmem:[%s2238_s13 + $0x30] sm:$0xff] }
 0x3c6   :  { %v1095_v36 = vadd.f32 %v1091_v55, %v1083_v29  ;;  %v1094_v63 = vadd.f32 %v1090_v57, %v1082_v54  ;;  %v1097_v0 = vadd.f32 %v1093_v30, %v1085_v35  ;;  %v1298_v1 = vmul.f32 %v1294_v52, %v2096_v33  ;;  %v1467_v30 = vld [vmem:[%s2238_s13 + $0x50] sm:$0xff] }
 0x3c7   :  { %v1304_v2 = vmul.f32 %v1302_v60, %v867_v3  ;;  %v1303_v5 = vmul.f32 %v1302_v60, %v866_v8  ;;  %v1306_v56 = vmul.f32 %v1302_v60, %v869_v9  ;;  %v1305_v7 = vmul.f32 %v1302_v60, %v868_v10 }
 0x3c8   :  { %1713 = vmatpush3.bf16.msra.mxu0 %v1710_v47  ;;  %v1084_v32 = vmul.f32 %v1081_v44, %v2098_v34  ;;  %v1297_v22 = vmul.f32 %v1294_v52, %v2098_v34  ;;  %v1290_v10 = vmul.f32 %v2137_v43, %v1288_v59  ;;  %v1456_v34 = vld [vmem:[%s2238_s13 + $0x38] sm:$0xff]  ;;  %v931_v43 = vpop.permute.xlu0 %930  ;;  %v1101_v20 = vrot.slane %v1077_v4, %v1100_v12 }
 0x3c9   :  { %v1308_v40 = vadd.f32 %v1304_v2, %v1296_v61  ;;  %v1307_v33 = vadd.f32 %v1303_v5, %v1295_v62  ;;  %v1310_v3 = vadd.f32 %v1306_v56, %v1298_v1  ;;  %v1784_v60 = vmov 0.0|0.0   ;;  %v1128_v61 = vpop.permute.xlu1 %1127 }
 0x3ca   :  { %v1096_v8 = vadd.f32 %v1092_v58, %v1084_v32  ;;  %v1309_v9 = vadd.f32 %v1305_v7, %v1297_v22  ;;  %v2181_v6 = vrot.slane %v1290_v10, %v895_v53  ;;  %v1314_v53 = vrot.slane %v1287_v38, %v346_v16  ;;  %v1468_v58 = vld [vmem:[%s2238_s13 + $0x58] sm:$0xff]  ;;  %1722 = vmatprep.subr.bf16.mxu0 %v1784_v60 }
 0x3cb   :  { %1632 = vmatmul.mubr.msk.f32.vlgmr.msra.gmra.mrb[12].mxu0 %vm222_vm2, %v1454_v39  ;;  %v1786_v38 = vmov 0.0  }
 0x3cc   :  { %1634 = vmatprep.mubr.msk.f32.mxu0 %vm222_vm2, %v1455_v24  ;;  %v941_v21 = vpop.permute.xlu0 %940 }
 0x3cd   :  { %v1138_v5 = vpop.permute.xlu1 %1137 }
 0x3cf   :  { %1635 = vmatmul.mubr.msk.f32.gmra.mrb[14].mxu0 %vm222_vm2, %v1456_v34 }
 0x3d0   :  { %1659 = vmatprep.mubr.msk.f32.mxu0 %vm1785_vm3, %v1786_v38  ;;  %v1123_v62 = vpop.permute.xlu0 %1122 }
 0x3d4   :  { %v1133_v39 = vpop.permute.xlu0 %1132 }
 0x49e   :  { %v1633_v14 = vpop.f32.mrb[12].mxu0 }
 0x49f   :  { %v1027_v15 = vadd.f32 %v1633_v14, %v931_v43  ;;  %v1021_v17 = vpop.f32.mrb[13].mxu0 }
 0x4a0   :  { %v1022_v18 = vadd.f32 %v1021_v17, %v2124_v41  ;;  %v1340_v17 = vpop.permute.xlu0 %1339 }
 0x4a1   :  { %v1041_v19 = vmax.f32 %v1027_v15, 0.0  ;;  %v1335_v15 = vld [vmem:[%s2240_s15] sm:$0xff] }
 0x4a2   :  { %v1040_v23 = vmax.f32 %v1022_v18, 0.0  ;;  %v1636_v25 = vpop.f32.mrb[14].mxu0 }
 0x4a3   :  { %v1103_v26 = vmul.f32 %v1101_v20, %v1041_v19  ;;  %v1316_v27 = vmul.f32 %v1314_v53, %v1041_v19  ;;  %v1037_v28 = vadd.f32 %v1636_v25, %v941_v21  ;;  %v1031_v31 = vpop.f32.mrb[15].mxu0 }
 0x4a4   :  { %v1102_v37 = vmul.f32 %v1101_v20, %v1040_v23  ;;  %v1315_v44 = vmul.f32 %v1314_v53, %v1040_v23  ;;  %v1032_v45 = vadd.f32 %v1031_v31, %v2126_v42  ;;  %v1466_v42 = vld [vmem:[%s2238_s13 + $0x48] sm:$0xff] }
 0x4a5   :  { %v1107_v46 = vadd.f32 %v1103_v26, %v1095_v36  ;;  %v1320_v47 = vadd.f32 %v1316_v27, %v1308_v40  ;;  %v1043_v48 = vmax.f32 %v1037_v28, 0.0 }
 0x4a6   :  { %v1106_v41 = vadd.f32 %v1102_v37, %v1094_v63  ;;  %v1319_v49 = vadd.f32 %v1315_v44, %v1307_v33  ;;  %v1042_v4 = vmax.f32 %v1032_v45, 0.0 }
 0x4a7   :  { %v1105_v29 = vmul.f32 %v1101_v20, %v1043_v48  ;;  %v1318_v13 = vmul.f32 %v1314_v53, %v1043_v48 }
 0x4a8   :  { %v1104_v16 = vmul.f32 %v1101_v20, %v1042_v4  ;;  %v1317_v50 = vmul.f32 %v1314_v53, %v1042_v4  ;;  %v1714_v51 = vpack.c.bf16 %v1107_v46, %v1106_v41 }
 0x4a9   :  { %v1109_v52 = vadd.f32 %v1105_v29, %v1097_v0  ;;  %v1322_v54 = vadd.f32 %v1318_v13, %v1310_v3 }
 0x4aa   :  { %v1108_v35 = vadd.f32 %v1104_v16, %v1096_v8  ;;  %v1321_v55 = vadd.f32 %v1317_v50, %v1309_v9  ;;  %1715 = vmatprep.subr.bf16.mxu1 %v1714_v51 }
 0x4ab   :  { %1717 = vmatpush3.bf16.msra.mxu1 %v1714_v51 }
 0x4ac   :  { %v1718_v57 = vpack.c.bf16 %v1109_v52, %v1108_v35 }
 0x4ae   :  { %1719 = vmatprep.subr.bf16.mxu1 %v1718_v57 }
 0x4af   :  { %1721 = vmatpush3.bf16.msra.mxu1 %v1718_v57 }
 0x4b2   :  { %1646 = vmatmul.mubr.msk.f32.vlgmr.msra.gmra.mrb[10].mxu1 %vm222_vm2, %v1466_v42 }
 0x4b3   :  { %1648 = vmatprep.mubr.msk.f32.mxu1 %vm222_vm2, %v1467_v30 }
 0x4b6   :  { %1649 = vmatmul.mubr.msk.f32.gmra.mrb[12].mxu1 %vm222_vm2, %v1468_v58 }
 0x585   :  { %v1647_v36 = vpop.f32.mrb[10].mxu1 }
 0x586   :  { %v1224_v63 = vadd.f32 %v1647_v36, %v1128_v61  ;;  %v1218_v0 = vpop.f32.mrb[11].mxu1 }
 0x587   :  { %v1219_v1 = vadd.f32 %v1218_v0, %v1123_v62 }
 0x588   :  { %v1238_v2 = vmax.f32 %v1224_v63, 0.0 }
 0x589   :  { %v1237_v56 = vmax.f32 %v1219_v1, 0.0  ;;  %v1650_v7 = vpop.f32.mrb[12].mxu1 }
 0x58a   :  { %v1328_v32 = vmul.f32 %v2181_v6, %v1238_v2  ;;  %v1234_v22 = vadd.f32 %v1650_v7, %v1138_v5  ;;  %v1228_v59 = vpop.f32.mrb[13].mxu1 }
 0x58b   :  { %v1327_v24 = vmul.f32 %v2181_v6, %v1237_v56  ;;  %v1229_v40 = vadd.f32 %v1228_v59, %v1133_v39 }
 0x58c   :  { %v1332_v33 = vadd.f32 %v1328_v32, %v1320_v47  ;;  %v1240_v3 = vmax.f32 %v1234_v22, 0.0 }
 0x58d   :  { %v1331_v8 = vadd.f32 %v1327_v24, %v1319_v49  ;;  %v1239_v9 = vmax.f32 %v1229_v40, 0.0 }
 0x58e   :  { %v1330_v10 = vmul.f32 %v2181_v6, %v1240_v3 }
 0x58f   :  { %v1723_v34 = vpack.c.bf16 %v1332_v33, %v1331_v8  ;;  %v1329_v11 = vmul.f32 %v2181_v6, %v1239_v9 }
 0x590   :  { %v1334_v43 = vadd.f32 %v1330_v10, %v1322_v54 }
 0x591   :  { %v1333_v12 = vadd.f32 %v1329_v11, %v1321_v55  ;;  %1724 = vmatpush3.bf16.msra.mxu0 %v1723_v34 }
 0x592   :  { %1725 = vmatprep.subr.bf16.mxu0 %v1784_v60 }
 0x593   :  { %v1726_v14 = vpack.c.bf16 %v1334_v43, %v1333_v12 }
 0x595   :  { %1727 = vmatpush3.bf16.msra.mxu0 %v1726_v14 }
 0x598   :  { %1660 = vmatmul.mubr.msk.f32.vlgmr.msra.gmra.mrb[16].mxu0 %vm222_vm2, %v1335_v15 }
 0x66b   :  { %v1411_v18 = vpop.f32.mrb[16].mxu0 }
 0x66c   :  { %v1412_v19 = vadd.f32 %v1411_v18, %v1340_v17  ;;  %v1661_v20 = vpop.f32.mrb[17].mxu0 }
 0x66e   :  { %1415 = vst [vmem:[#allocation2] sm:$0xff] %v1412_v19 }
 0x66f   :  { %1770 = shalt.err (!%p1767_p4)
}
 0x670   :  { %s1771_s15 = scalar_lea.hbm %s2242_s17, 128 }
 0x671   :  { %p1772_p5 = scmp.ne.s32.totalorder %s2242_s17, %s1771_s15  ;;  %p1775_p6 = scmp.lt.u32.totalorder %s1771_s15, %s2242_s17 }
 0x673   :  { %p1777_p7 = pnand %p1775_p6, %p1772_p5 }
 0x675   :  { %1780 = shalt.err (!%p1777_p7)
}
 0x676   :  { %1425 = dma.vmem_to_hbm [thread:$0]  %s1423_s11, 128, %s2242_s17, [#allocation3]  }
 0x677   :  { %1781 = dma.done.wait [#allocation3], 128  }
 0x678   :  { %1782 = vsyncadd [#allocation3], 4294967168 }
 0x679   :  { %1429 = vsyncpa [#allocation3], 1 }

</bundles_post_ra>
